<compile_context>
chip_gen: v7x
topology: tpu7x:2x2x1
jax: 0.10.0
libtpu: 0.0.40
codegen_flags: <defaults>
</compile_context>

<pallas_src>
import functools

import jax
import jax.numpy as jnp
from jax.experimental import pallas as pl
from jax.experimental.pallas import tpu as pltpu

N_IN = 784
N_OUT = 10
N_PAD = 128  # lane-dense padded width for the 10-wide fc1/fc2 feature dims


def _round_up(x, m):
    return ((x + m - 1) // m) * m


def _mlp_kernel(x_ref, w1_ref, b1_ref, w2_ref, b2_ref, o_ref, *, mxu_bf16):
    # fc1: (TB, 784) @ (784, 128) -> f32 accumulate on the MXU; bias + ReLU on the VPU.
    # With mxu_bf16=True the operands are cast in-kernel (HBM traffic unchanged, but the
    # MXU runs single-pass bf16 instead of multi-pass f32 — matters on v5e).
    cd = jnp.bfloat16 if mxu_bf16 else jnp.float32
    h = jnp.dot(x_ref[...].astype(cd), w1_ref[...].astype(cd),
                preferred_element_type=jnp.float32)
    h = jnp.maximum(h + b1_ref[...], 0.0)
    # fc2: (TB, 128) @ (128, 128) + (1, 128) — tiny MXU work, kept in f32 for precision.
    o = jnp.dot(h, w2_ref[...], preferred_element_type=jnp.float32)
    o_ref[...] = (o + b2_ref[...]).astype(o_ref.dtype)


def pad_params(w1, b1, w2, b2):
    """Zero-pad the 10-wide feature dims to a lane-dense 128.  Call once, reuse."""
    w1p = jnp.zeros((N_IN, N_PAD), jnp.float32).at[:, :N_OUT].set(w1)
    b1p = jnp.zeros((1, N_PAD), jnp.float32).at[0, :N_OUT].set(b1)
    w2p = jnp.zeros((N_PAD, N_PAD), jnp.float32).at[:N_OUT, :N_OUT].set(w2)
    b2p = jnp.zeros((1, N_PAD), jnp.float32).at[0, :N_OUT].set(b2)
    return w1p, b1p, w2p, b2p


@functools.partial(jax.jit, static_argnames=("block_b", "mxu_bf16", "slice_output"))
def digit_recognizer_forward(x, w1p, b1p, w2p, b2p, *, block_b=2048,
                             mxu_bf16=False, slice_output=True):
    """x: (B, 784); padded params from pad_params(). Returns (B, 10) f32 logits."""
    B = x.shape[0]

    # Batch tile: sublane(8)-aligned; aim for >= 2 balanced grid steps (so v7x's two
    # TensorCores both get work under dimension_semantics=("parallel",)), capped at
    # block_b.  No padding of x in the wrapper: grid = cdiv(B, tb) and the trailing
    # partial block is handled by Pallas — its out-of-bounds rows read unspecified
    # values, which is safe ONLY because batch rows are fully independent and output
    # stores are masked to the real B rows.  Do NOT add any cross-batch reduction to
    # the kernel without revisiting this.
    block_b = _round_up(max(block_b, 8), 8)
    tb = max(8, min(block_b, _round_up(pl.cdiv(B, 2), 8)))
    grid_b = pl.cdiv(B, tb)

    out = pl.pallas_call(
        functools.partial(_mlp_kernel, mxu_bf16=mxu_bf16),
        out_shape=jax.ShapeDtypeStruct((B, N_PAD), jnp.float32),
        grid_spec=pltpu.PrefetchScalarGridSpec(
            num_scalar_prefetch=0,
            grid=(grid_b,),
            in_specs=[
                # x: streamed per batch tile, double-buffered against the MXU work.
                pl.BlockSpec((tb, N_IN), lambda i: (i, 0)),
                # Weights / biases: constant index_maps => fetched once, VMEM-resident.
                # Single-buffered to reclaim the useless second buffer (~0.5 MiB).
                pl.BlockSpec((N_IN, N_PAD), lambda i: (0, 0),
                             pipeline_mode=pl.Buffered(1)),
                pl.BlockSpec((1, N_PAD), lambda i: (0, 0),
                             pipeline_mode=pl.Buffered(1)),
                pl.BlockSpec((N_PAD, N_PAD), lambda i: (0, 0),
                             pipeline_mode=pl.Buffered(1)),
                pl.BlockSpec((1, N_PAD), lambda i: (0, 0),
                             pipeline_mode=pl.Buffered(1)),
            ],
            out_specs=pl.BlockSpec((tb, N_PAD), lambda i: (i, 0)),
        ),
        compiler_params=pltpu.CompilerParams(
            dimension_semantics=("parallel",),   # batch tiles shard across TCs on v7x
            # tb=2048 f32 footprint: x 2*2048*896*4 ~= 14.7 MiB + out 2 MiB + weights
            # ~0.5 MiB ~= 17 MiB; raise the scoped limit so v5e's 16 MiB default is safe.
            vmem_limit_bytes=40 << 20,
        ),
    )(x, w1p, b1p, w2p, b2p)

    # Column slice only (row count is already exactly B).  Consumers that can fuse the
    # slice themselves can pass slice_output=False and take the lane-padded (B, 128).
    return out[:, :N_OUT] if slice_output else out


def init_params(key):
    # Deterministic synthetic init (PyTorch-Linear-like uniform ranges).
    k1, k2, k3, k4 = jax.random.split(key, 4)
    bound1 = 1.0 / jnp.sqrt(784.0)
    bound2 = 1.0 / jnp.sqrt(10.0)
    w1 = jax.random.uniform(k1, (784, 10), jnp.float32, -bound1, bound1)
    b1 = jax.random.uniform(k2, (10,), jnp.float32, -bound1, bound1)
    w2 = jax.random.uniform(k3, (10, 10), jnp.float32, -bound2, bound2)
    b2 = jax.random.uniform(k4, (10,), jnp.float32, -bound2, bound2)
    return w1, b1, w2, b2


if __name__ == "__main__":
    key = jax.random.PRNGKey(0)
    kx, kp, kx2 = jax.random.split(key, 3)
    w1, b1, w2, b2 = init_params(kp)
    params = pad_params(w1, b1, w2, b2)   # padded once, reused across calls

    # Small-shape check (exact f32 path, matches the PyTorch forward semantics).
    B = 2
    x = jax.random.normal(kx, (B, 784), jnp.float32)
    out = jax.block_until_ready(digit_recognizer_forward(x, *params))
    ref = jnp.maximum(x @ w1 + b1, 0.0) @ w2 + b2
    assert out.shape == (B, N_OUT)
    assert jnp.allclose(out, ref, atol=1e-5, rtol=1e-5)

    # Multi-tile + ragged-tail check: B=300, tb=128 -> 3 grid steps, last one partial
    # (exercises the no-pad path where Pallas masks the trailing block).
    B2 = 300
    x2 = jax.random.normal(kx2, (B2, 784), jnp.float32)
    out2 = jax.block_until_ready(
        digit_recognizer_forward(x2, *params, block_b=128))
    ref2 = jnp.maximum(x2 @ w1 + b1, 0.0) @ w2 + b2
    assert out2.shape == (B2, N_OUT)
    assert jnp.allclose(out2, ref2, atol=1e-5, rtol=1e-5)

    # In-kernel bf16 MXU operands for fc1 (v5e relief); looser tolerance vs f32 ref.
    out_bf16 = jax.block_until_ready(
        digit_recognizer_forward(x2, *params, block_b=128, mxu_bf16=True))
    assert out_bf16.shape == (B2, N_OUT)
    assert jnp.allclose(out_bf16, ref2, atol=5e-2, rtol=5e-2)

    print("KERNEL_OK")
</pallas_src>

<mosaic_0001>
module attributes {stable_mosaic.version = 11 : i64} {
  func.func @_mlp_kernel(%arg0: i32, %arg1: memref<8x784xf32, #tpu.memory_space<vmem>>, %arg2: memref<784x128xf32, #tpu.memory_space<vmem>>, %arg3: memref<1x128xf32, #tpu.memory_space<vmem>>, %arg4: memref<128x128xf32, #tpu.memory_space<vmem>>, %arg5: memref<1x128xf32, #tpu.memory_space<vmem>>, %arg6: memref<8x128xf32, #tpu.memory_space<vmem>>) attributes {dimension_semantics = [#tpu.dimension_semantics<parallel>], iteration_bounds = array<i64: 1>, scalar_prefetch = 0 : i64, scratch_operands = 0 : i64, tpu.core_type = #tpu.core_type<tc>, window_params = [{transform_indices = @transform_0, window_bounds = array<i64: 8, 784>}, {pipeline_mode = #tpu.pipeline_mode<synchronous>, transform_indices = @transform_1, window_bounds = array<i64: 784, 128>}, {pipeline_mode = #tpu.pipeline_mode<synchronous>, transform_indices = @transform_2, window_bounds = array<i64: 1, 128>}, {pipeline_mode = #tpu.pipeline_mode<synchronous>, transform_indices = @transform_3, window_bounds = array<i64: 128, 128>}, {pipeline_mode = #tpu.pipeline_mode<synchronous>, transform_indices = @transform_4, window_bounds = array<i64: 1, 128>}, {transform_indices = @transform_5, window_bounds = array<i64: 8, 128>}]} {
    %c0 = arith.constant 0 : index
    %c0_0 = arith.constant 0 : index
    %0 = vector.load %arg1[%c0, %c0_0] : memref<8x784xf32, #tpu.memory_space<vmem>>, vector<8x784xf32>
    %c0_1 = arith.constant 0 : index
    %c0_2 = arith.constant 0 : index
    %1 = vector.load %arg2[%c0_1, %c0_2] : memref<784x128xf32, #tpu.memory_space<vmem>>, vector<784x128xf32>
    %cst = arith.constant dense<0.000000e+00> : vector<8x128xf32>
    %2 = tpu.matmul %0, %1, %cst {dimension_numbers = #tpu.dot_dimension_numbers<[1], [0], [0], [1], [0, 0, 1, 1], [], []>} : vector<8x784xf32>, vector<784x128xf32>, vector<8x128xf32> -> vector<8x128xf32>
    %c0_3 = arith.constant 0 : index
    %c0_4 = arith.constant 0 : index
    %3 = vector.load %arg3[%c0_3, %c0_4] : memref<1x128xf32, #tpu.memory_space<vmem>>, vector<1x128xf32>
    %4 = vector.broadcast %3 : vector<1x128xf32> to vector<8x128xf32>
    %5 = arith.addf %2, %4 : vector<8x128xf32>
    %cst_5 = arith.constant 0.000000e+00 : f32
    %6 = vector.broadcast %cst_5 : f32 to vector<8x128xf32>
    %7 = arith.maximumf %5, %6 : vector<8x128xf32>
    %c0_6 = arith.constant 0 : index
    %c0_7 = arith.constant 0 : index
    %8 = vector.load %arg4[%c0_6, %c0_7] : memref<128x128xf32, #tpu.memory_space<vmem>>, vector<128x128xf32>
    %cst_8 = arith.constant dense<0.000000e+00> : vector<8x128xf32>
    %9 = tpu.matmul %7, %8, %cst_8 {dimension_numbers = #tpu.dot_dimension_numbers<[1], [0], [0], [1], [0, 0, 1, 1], [], []>} : vector<8x128xf32>, vector<128x128xf32>, vector<8x128xf32> -> vector<8x128xf32>
    %c0_9 = arith.constant 0 : index
    %c0_10 = arith.constant 0 : index
    %10 = vector.load %arg5[%c0_9, %c0_10] : memref<1x128xf32, #tpu.memory_space<vmem>>, vector<1x128xf32>
    %11 = vector.broadcast %10 : vector<1x128xf32> to vector<8x128xf32>
    %12 = arith.addf %9, %11 : vector<8x128xf32>
    %c0_11 = arith.constant 0 : index
    %c0_12 = arith.constant 0 : index
    %13 = vector.load %arg6[%c0_11, %c0_12] : memref<8x128xf32, #tpu.memory_space<vmem>>, vector<8x128xf32>
    tpu.vector_store %arg6[%c0_11, %c0_12], %12 {strides = array<i32>} : memref<8x128xf32, #tpu.memory_space<vmem>>, vector<8x128xf32>,
    return
  }
  func.func @transform_0(%arg0: i32) -> (i32, i32) {
    %c0_i32 = arith.constant 0 : i32
    %c0_i32_0 = arith.constant 0 : i32
    return %arg0, %c0_i32 : i32, i32
  }
  func.func @transform_1(%arg0: i32) -> (i32, i32) {
    %c0_i32 = arith.constant 0 : i32
    %c0_i32_0 = arith.constant 0 : i32
    %c0_i32_1 = arith.constant 0 : i32
    return %c0_i32, %c0_i32_0 : i32, i32
  }
  func.func @transform_2(%arg0: i32) -> (i32, i32) {
    %c0_i32 = arith.constant 0 : i32
    %c0_i32_0 = arith.constant 0 : i32
    %c0_i32_1 = arith.constant 0 : i32
    return %c0_i32, %c0_i32_0 : i32, i32
  }
  func.func @transform_3(%arg0: i32) -> (i32, i32) {
    %c0_i32 = arith.constant 0 : i32
    %c0_i32_0 = arith.constant 0 : i32
    %c0_i32_1 = arith.constant 0 : i32
    return %c0_i32, %c0_i32_0 : i32, i32
  }
  func.func @transform_4(%arg0: i32) -> (i32, i32) {
    %c0_i32 = arith.constant 0 : i32
    %c0_i32_0 = arith.constant 0 : i32
    %c0_i32_1 = arith.constant 0 : i32
    return %c0_i32, %c0_i32_0 : i32, i32
  }
  func.func @transform_5(%arg0: i32) -> (i32, i32) {
    %c0_i32 = arith.constant 0 : i32
    %c0_i32_0 = arith.constant 0 : i32
    return %arg0, %c0_i32 : i32, i32
  }
}

</mosaic_0001>

<bundles_post_ra>
// kernel: digit_recognizer_forward.1
= control target key start
LH: loop header
LB: loop body
LE: loop exit
PB: predicated region body
PF: predicated region fallthrough
CT: control target
= control target key end

     0   :  { %10 = vsyncpa [#allocation3], 0  ;;  %s1194_s0 = inlined_call_operand.hbm [shape: f32[2,784], index: 0, kind: input, shape index: {}]   ;;  %s1195_s1 = inlined_call_operand.hbm [shape: f32[784,128], index: 1, kind: input, shape index: {}]   ;;  %s1196_s2 = inlined_call_operand.vmem [shape: f32[1,128], index: 2, kind: input, shape index: {}]   ;;  %s1197_s3 = inlined_call_operand.hbm [shape: f32[128,128], index: 3, kind: input, shape index: {}]   ;;  %s1198_s4 = inlined_call_operand.vmem [shape: f32[1,128], index: 4, kind: input, shape index: {}]   ;;  %s1199_s5 = inlined_call_operand.hbm [shape: f32[2,128], index: 5, kind: output, shape index: {}]  }
   0x1   :  { %11 = vsyncpa [#allocation6], 0 }
   0x2   :  { %12 = vsyncpa [#allocation4], 0 }
   0x3   :  { %17 = vsyncadd [#allocation3], 672  ;;  %s1069_s18 = smov [#allocation5]   ;;  %s975_s22 = scalar_lea.hbm %s1195_s1, 12544 }
   0x4   :  { %s30_s19 = sshll.u32 %s1069_s18, 4  ;;  %p976_p0 = scmp.ne.s32.totalorder %s1195_s1, %s975_s22  ;;  %s31_s19 = int_to_ptr.vmem [resolvable:$true] %s30_s19 }
   0x5   :  { %p979_p1 = scmp.lt.u32.totalorder %s975_s22, %s1195_s1 }
   0x7   :  { %p981_p2 = pnand %p979_p1, %p976_p0 }
   0x9   :  { %984 = shalt.err (!%p981_p2)
}
   0xa   :  { %s985_s27 = scalar_lea.vmem %s31_s19, 12544  ;;  %p990_p4 = scmp.lt.s32.totalorder %s31_s19, %s31_s19 }
   0xb   :  { %p986_p3 = scmp.ne.s32.totalorder %s31_s19, %s985_s27  ;;  %p991_p5 = scmp.lt.s32.totalorder %s985_s27, %s985_s27 }
   0xd   :  { %p992_p6 = por %p991_p5, %p990_p4 }
   0xf   :  { %p993_p7 = pnand %p992_p6, %p986_p3 }
  0x11   :  { %996 = shalt.err (!%p993_p7)
}
  0x12   :  { %s1070_s28 = smov 128   ;;  %s1071_s29 = smov 8  }
  0x13   :  { %36 = dma.hbm_to_vmem [thread:$0]  %s1195_s1, 12544, %s31_s19, [#allocation6], %s1070_s28, %s1070_s28, %s1071_s29  }
  0x14   :  { %s1072_s7 = smov [#allocation2]   ;;  %s997_s11 = scalar_lea.hbm %s1194_s0, 224 }
  0x15   :  { %s18_s8 = sshll.u32 %s1072_s7, 4  ;;  %p998_p8 = scmp.ne.s32.totalorder %s1194_s0, %s997_s11  ;;  %s19_s8 = int_to_ptr.vmem [resolvable:$true] %s18_s8 }
  0x16   :  { %p1001_p9 = scmp.lt.u32.totalorder %s997_s11, %s1194_s0 }
  0x18   :  { %p1003_p10 = pnand %p1001_p9, %p998_p8 }
  0x1a   :  { %1006 = shalt.err (!%p1003_p10)
}
  0x1b   :  { %s1007_s16 = scalar_lea.vmem %s19_s8, 224  ;;  %s1011_s1 = scalar_lea.vmem %s19_s8, 896 }
  0x1c   :  { %p1008_p11 = scmp.ne.s32.totalorder %s19_s8, %s1007_s16  ;;  %p1012_p12 = scmp.lt.s32.totalorder %s19_s8, %s19_s8 }
  0x1d   :  { %p1013_p13 = scmp.lt.s32.totalorder %s1011_s1, %s1007_s16 }
  0x1f   :  { %p1014_p0 = por %p1013_p13, %p1012_p12 }
  0x21   :  { %p1015_p1 = pnand %p1014_p0, %p1008_p11 }
  0x23   :  { %1018 = shalt.err (!%p1015_p1)
}
  0x24   :  { %s1073_s17 = smov 224   ;;  %s1074_s18 = smov 14  }
  0x25   :  { %24 = dma.hbm_to_vmem [thread:$0]  %s1194_s0, 224, %s19_s8, [#allocation3], %s1073_s17, %s1073_s17, %s1074_s18  }
  0x26   :  { %s1075_s21 = smov [#allocation7]   ;;  %s1019_s25 = scalar_lea.hbm %s1197_s3, 2048 }
  0x27   :  { %s44_s22 = sshll.u32 %s1075_s21, 4  ;;  %p1020_p2 = scmp.ne.s32.totalorder %s1197_s3, %s1019_s25  ;;  %s45_s22 = int_to_ptr.vmem [resolvable:$true] %s44_s22 }
  0x28   :  { %p1023_p3 = scmp.lt.u32.totalorder %s1019_s25, %s1197_s3 }
  0x2a   :  { %p1025_p4 = pnand %p1023_p3, %p1020_p2 }
  0x2c   :  { %1028 = shalt.err (!%p1025_p4)
}
  0x2d   :  { %s1029_s7 = scalar_lea.vmem %s45_s22, 2048  ;;  %p1034_p6 = scmp.lt.s32.totalorder %s45_s22, %s45_s22 }
  0x2e   :  { %p1030_p5 = scmp.ne.s32.totalorder %s45_s22, %s1029_s7  ;;  %p1035_p7 = scmp.lt.s32.totalorder %s1029_s7, %s1029_s7 }
  0x30   :  { %p1036_p8 = por %p1035_p7, %p1034_p6 }
  0x32   :  { %p1037_p9 = pnand %p1036_p8, %p1030_p5 }
  0x34   :  { %1040 = shalt.err (!%p1037_p9)
}
  0x35   :  { %50 = dma.hbm_to_vmem [thread:$0]  %s1197_s3, 2048, %s45_s22, [#allocation6], %s1070_s28, %s1070_s28, %s1071_s29  }
  0x36   :  { %1063 = dma.done.wait [#allocation3], 896  }
  0x37   :  { %1064 = vsyncadd [#allocation3], 4294966400 }
  0x38   :  { %1065 = dma.done.wait [#allocation6], 14592  }
  0x39   :  { %1066 = vsyncadd [#allocation6], 4294952704  ;;  %v86_v0 = vld [vmem:[#allocation5 + $0x80] sm:$0xff]  ;;  %v87_v1 = vld [vmem:[#allocation5 + $0x88] sm:$0xff]  ;;  %v1076_v51 = vmov 1983009808   ;;  %v190_v53 = vlaneseq }
  0x3a   :  { %v70_v2 = vld [vmem:[#allocation5] sm:$0xff]  ;;  %v826_v3 = vpack.c.bf16 %v87_v1, %v86_v0  ;;  %v71_v4 = vld [vmem:[#allocation5 + $0x8] sm:$0xff]  ;;  %v88_v11 = vld [vmem:[#allocation5 + $0x90] sm:$0xff]  ;;  %v188_v52 = vunpack.c.l.s4 %v1076_v51  ;;  %vm1078_vm0 = vmmov 0   ;;  %vm260_vm1 = vcmask 130048  }
  0x3b   :  { %v118_v5 = vld [vmem:[#allocation5 + $0x180] sm:$0xff]  ;;  %v119_v6 = vld [vmem:[#allocation5 + $0x188] sm:$0xff]  ;;  %v828_v7 = vpack.c.bf16 %v71_v4, %v70_v2  ;;  %v89_v13 = vld [vmem:[#allocation5 + $0x98] sm:$0xff] }
  0x3c   :  { %v858_v8 = vpack.c.bf16 %v119_v6, %v118_v5  ;;  %v102_v9 = vld [vmem:[#allocation5 + $0x100] sm:$0xff]  ;;  %v103_v10 = vld [vmem:[#allocation5 + $0x108] sm:$0xff]  ;;  %827 = vmatprep.subr.bf16.mxu0 %v826_v3  ;;  %v72_v14 = vld [vmem:[#allocation5 + $0x10] sm:$0xff]  ;;  %v830_v16 = vpack.c.bf16 %v89_v13, %v88_v11  ;;  %v189_v2 = vunpack.c.0.s8 %v188_v52  ;;  %v191_v3 = vshrl.u32 %v190_v53, 7 }
  0x3d   :  { %v860_v12 = vpack.c.bf16 %v103_v10, %v102_v9  ;;  %v73_v15 = vld [vmem:[#allocation5 + $0x18] sm:$0xff]  ;;  %829 = vmatpush3.bf16.msra.mxu0 %v828_v7  ;;  %v120_v18 = vld [vmem:[#allocation5 + $0x190] sm:$0xff]  ;;  %v90_v23 = vld [vmem:[#allocation5 + $0xa0] sm:$0xff] }
  0x3e   :  { %859 = vmatprep.subr.bf16.mxu1 %v858_v8  ;;  %v832_v17 = vpack.c.bf16 %v73_v15, %v72_v14  ;;  %v121_v19 = vld [vmem:[#allocation5 + $0x198] sm:$0xff]  ;;  %v104_v20 = vld [vmem:[#allocation5 + $0x110] sm:$0xff]  ;;  %v91_v24 = vld [vmem:[#allocation5 + $0xa8] sm:$0xff]  ;;  %831 = vmatprep.subr.bf16.mxu0 %v830_v16 }
  0x3f   :  { %861 = vmatpush3.bf16.msra.mxu1 %v860_v12  ;;  %v862_v21 = vpack.c.bf16 %v121_v19, %v120_v18  ;;  %v105_v22 = vld [vmem:[#allocation5 + $0x118] sm:$0xff]  ;;  %v834_v26 = vpack.c.bf16 %v91_v24, %v90_v23  ;;  %v74_v27 = vld [vmem:[#allocation5 + $0x20] sm:$0xff]  ;;  %v75_v28 = vld [vmem:[#allocation5 + $0x28] sm:$0xff] }
  0x40   :  { %v864_v25 = vpack.c.bf16 %v105_v22, %v104_v20  ;;  %v122_v29 = vld [vmem:[#allocation5 + $0x1a0] sm:$0xff]  ;;  %v123_v30 = vld [vmem:[#allocation5 + $0x1a8] sm:$0xff]  ;;  %v836_v33 = vpack.c.bf16 %v75_v28, %v74_v27  ;;  %v92_v35 = vld [vmem:[#allocation5 + $0xb0] sm:$0xff] }
  0x41   :  { %863 = vmatprep.subr.bf16.mxu1 %v862_v21  ;;  %v106_v31 = vld [vmem:[#allocation5 + $0x120] sm:$0xff]  ;;  %v107_v32 = vld [vmem:[#allocation5 + $0x128] sm:$0xff]  ;;  %833 = vmatpush3.bf16.msra.mxu0 %v832_v17  ;;  %v866_v34 = vpack.c.bf16 %v123_v30, %v122_v29  ;;  %v93_v36 = vld [vmem:[#allocation5 + $0xb8] sm:$0xff]  ;;  %v1155_v21 = vsub.s32 %v189_v2, %v191_v3 }
  0x42   :  { %v76_v37 = vld [vmem:[#allocation5 + $0x30] sm:$0xff]  ;;  %835 = vmatprep.subr.bf16.mxu0 %v834_v26  ;;  %v868_v38 = vpack.c.bf16 %v107_v32, %v106_v31  ;;  %v838_v39 = vpack.c.bf16 %v93_v36, %v92_v35  ;;  %v77_v40 = vld [vmem:[#allocation5 + $0x38] sm:$0xff]  ;;  %v94_v46 = vld [vmem:[#allocation5 + $0xc0] sm:$0xff] }
  0x43   :  { %865 = vmatpush3.bf16.msra.mxu1 %v864_v25  ;;  %v124_v41 = vld [vmem:[#allocation5 + $0x1b0] sm:$0xff]  ;;  %v125_v42 = vld [vmem:[#allocation5 + $0x1b8] sm:$0xff]  ;;  %v95_v47 = vld [vmem:[#allocation5 + $0xc8] sm:$0xff]  ;;  %v840_v48 = vpack.c.bf16 %v77_v40, %v76_v37 }
  0x44   :  { %867 = vmatprep.subr.bf16.mxu1 %v866_v34  ;;  %v870_v43 = vpack.c.bf16 %v125_v42, %v124_v41  ;;  %v108_v44 = vld [vmem:[#allocation5 + $0x130] sm:$0xff]  ;;  %v109_v45 = vld [vmem:[#allocation5 + $0x138] sm:$0xff]  ;;  %v126_v49 = vld [vmem:[#allocation5 + $0x1c0] sm:$0xff]  ;;  %v842_v55 = vpack.c.bf16 %v95_v47, %v94_v46 }
  0x45   :  { %837 = vmatpush3.bf16.msra.mxu0 %v836_v33  ;;  %v127_v50 = vld [vmem:[#allocation5 + $0x1c8] sm:$0xff]  ;;  %v872_v54 = vpack.c.bf16 %v109_v45, %v108_v44  ;;  %v78_v56 = vld [vmem:[#allocation5 + $0x40] sm:$0xff]  ;;  %v96_v61 = vld [vmem:[#allocation5 + $0xd0] sm:$0xff] }
  0x46   :  { %839 = vmatprep.subr.bf16.mxu0 %v838_v39  ;;  %v79_v57 = vld [vmem:[#allocation5 + $0x48] sm:$0xff]  ;;  %v110_v58 = vld [vmem:[#allocation5 + $0x140] sm:$0xff]  ;;  %v874_v59 = vpack.c.bf16 %v127_v50, %v126_v49  ;;  %v97_v62 = vld [vmem:[#allocation5 + $0xd8] sm:$0xff] }
  0x47   :  { %869 = vmatpush3.bf16.msra.mxu1 %v868_v38  ;;  %v111_v60 = vld [vmem:[#allocation5 + $0x148] sm:$0xff]  ;;  %v128_v63 = vld [vmem:[#allocation5 + $0x1d0] sm:$0xff]  ;;  %v129_v0 = vld [vmem:[#allocation5 + $0x1d8] sm:$0xff]  ;;  %v844_v1 = vpack.c.bf16 %v79_v57, %v78_v56  ;;  %v846_v5 = vpack.c.bf16 %v97_v62, %v96_v61 }
  0x48   :  { %871 = vmatprep.subr.bf16.mxu1 %v870_v43  ;;  %v876_v4 = vpack.c.bf16 %v111_v60, %v110_v58  ;;  %v80_v6 = vld [vmem:[#allocation5 + $0x50] sm:$0xff]  ;;  %v81_v7 = vld [vmem:[#allocation5 + $0x58] sm:$0xff]  ;;  %v878_v9 = vpack.c.bf16 %v129_v0, %v128_v63  ;;  %v98_v11 = vld [vmem:[#allocation5 + $0xe0] sm:$0xff]  ;;  %v1077_v63 = vmov 0.0|0.0  }
  0x49   :  { %841 = vmatpush3.bf16.msra.mxu0 %v840_v48  ;;  %v112_v8 = vld [vmem:[#allocation5 + $0x150] sm:$0xff]  ;;  %v113_v10 = vld [vmem:[#allocation5 + $0x158] sm:$0xff]  ;;  %v99_v12 = vld [vmem:[#allocation5 + $0xe8] sm:$0xff]  ;;  %v848_v17 = vpack.c.bf16 %v81_v7, %v80_v6 }
  0x4a   :  { %843 = vmatprep.subr.bf16.mxu0 %v842_v55  ;;  %v82_v13 = vld [vmem:[#allocation5 + $0x60] sm:$0xff]  ;;  %v83_v14 = vld [vmem:[#allocation5 + $0x68] sm:$0xff]  ;;  %v100_v20 = vld [vmem:[#allocation5 + $0xf0] sm:$0xff]  ;;  %v880_v22 = vpack.c.bf16 %v113_v10, %v112_v8  ;;  %v850_v23 = vpack.c.bf16 %v99_v12, %v98_v11  ;;  %v1079_v10 = vmov 0.0  }
  0x4b   :  { %873 = vmatpush3.bf16.msra.mxu1 %v872_v54  ;;  %v130_v15 = vld [vmem:[#allocation5 + $0x1e0] sm:$0xff]  ;;  %v131_v16 = vld [vmem:[#allocation5 + $0x1e8] sm:$0xff]  ;;  %v101_v25 = vld [vmem:[#allocation5 + $0xf8] sm:$0xff]  ;;  %v852_v30 = vpack.c.bf16 %v83_v14, %v82_v13 }
  0x4c   :  { %875 = vmatprep.subr.bf16.mxu1 %v874_v59  ;;  %v114_v18 = vld [vmem:[#allocation5 + $0x160] sm:$0xff]  ;;  %v115_v19 = vld [vmem:[#allocation5 + $0x168] sm:$0xff]  ;;  %v882_v24 = vpack.c.bf16 %v131_v16, %v130_v15  ;;  %v132_v28 = vld [vmem:[#allocation5 + $0x1f0] sm:$0xff]  ;;  %v854_v36 = vpack.c.bf16 %v101_v25, %v100_v20 }
  0x4d   :  { %845 = vmatpush3.bf16.msra.mxu0 %v844_v1  ;;  %v963_v26 = vld [vmem:[#allocation2] ss:$14 sps:$4 sm:$0xff]   ;;  %v965_v27 = vld [vmem:[#allocation2 + $0x1c] ss:$14 sps:$4 sm:$0xff]   ;;  %v967_v33 = vld [vmem:[#allocation2 + $0x4] ss:$14 sps:$4 sm:$0xff]   ;;  %v884_v35 = vpack.c.bf16 %v115_v19, %v114_v18 }
  0x4e   :  { %847 = vmatprep.subr.bf16.mxu0 %v846_v5  ;;  %v133_v29 = vld [vmem:[#allocation5 + $0x1f8] sm:$0xff]  ;;  %v193_v31 = vrot.slane %v963_v26, %v1155_v21  ;;  %v207_v32 = vrot.slane %v965_v27, %v1155_v21  ;;  %v84_v37 = vld [vmem:[#allocation5 + $0x70] sm:$0xff]  ;;  %v150_v43 = vld [vmem:[#allocation5 + $0x280] sm:$0xff]  ;;  %v200_v45 = vrot.slane %v967_v33, %v1155_v21 }
  0x4f   :  { %877 = vmatpush3.bf16.msra.mxu1 %v876_v4  ;;  %v968_v34 = vld [vmem:[#allocation2 + $0x20] ss:$14 sps:$4 sm:$0xff]   ;;  %v886_v40 = vpack.c.bf16 %v133_v29, %v132_v28  ;;  %v134_v51 = vld [vmem:[#allocation5 + $0x200] sm:$0xff]  ;;  %v972_v7 = vld [vmem:[#allocation2 + $0x24] ss:$14 sps:$4 sm:$0xff]  }
  0x50   :  { %879 = vmatprep.subr.bf16.mxu1 %v878_v9  ;;  %v85_v38 = vld [vmem:[#allocation5 + $0x78] sm:$0xff]  ;;  %v116_v39 = vld [vmem:[#allocation5 + $0x170] sm:$0xff]  ;;  %v216_v41 = vcombine.high %v193_v31, %v207_v32  ;;  %v151_v44 = vld [vmem:[#allocation5 + $0x288] sm:$0xff]  ;;  %v214_v46 = vrot.slane %v968_v34, %v1155_v21  ;;  %v215_v55 = vcombine.low %v193_v31, %v207_v32  ;;  %v243_v16 = vrot.slane %v972_v7, %v1155_v21 }
  0x51   :  { %849 = vmatpush3.bf16.msra.mxu0 %v848_v17  ;;  %v117_v42 = vld [vmem:[#allocation5 + $0x178] sm:$0xff]  ;;  %v856_v47 = vpack.c.bf16 %v85_v38, %v84_v37  ;;  %v890_v50 = vpack.c.bf16 %v151_v44, %v150_v43  ;;  %v135_v52 = vld [vmem:[#allocation5 + $0x208] sm:$0xff]  ;;  %v152_v53 = vld [vmem:[#allocation5 + $0x290] sm:$0xff] }
  0x52   :  { %851 = vmatprep.subr.bf16.mxu0 %v850_v23  ;;  %327 = vmatprep.mubr.f32.mxu0 %v216_v41  ;;  %v218_v48 = vcombine.high %v200_v45, %v214_v46  ;;  %v888_v49 = vpack.c.bf16 %v117_v42, %v116_v39  ;;  %v153_v54 = vld [vmem:[#allocation5 + $0x298] sm:$0xff]  ;;  %v892_v56 = vpack.c.bf16 %v135_v52, %v134_v51  ;;  %v136_v59 = vld [vmem:[#allocation5 + $0x210] sm:$0xff]  ;;  %v154_v61 = vld [vmem:[#allocation5 + $0x2a0] sm:$0xff] }
  0x53   :  { %881 = vmatpush3.bf16.msra.mxu1 %v880_v22  ;;  %v217_v57 = vcombine.low %v200_v45, %v214_v46  ;;  %v894_v58 = vpack.c.bf16 %v153_v54, %v152_v53  ;;  %v137_v60 = vld [vmem:[#allocation5 + $0x218] sm:$0xff]  ;;  %v155_v62 = vld [vmem:[#allocation5 + $0x2a8] sm:$0xff]  ;;  %v138_v0 = vld [vmem:[#allocation5 + $0x220] sm:$0xff] }
  0x54   :  { %883 = vmatprep.subr.bf16.mxu1 %v882_v24  ;;  %397 = vmatprep.mubr.f32.mxu1 %v218_v48  ;;  %v139_v1 = vld [vmem:[#allocation5 + $0x228] sm:$0xff]  ;;  %v896_v2 = vpack.c.bf16 %v137_v60, %v136_v59  ;;  %v969_v3 = vld [vmem:[#allocation2 + $0x8] ss:$14 sps:$4 sm:$0xff]   ;;  %v971_v4 = vld [vmem:[#allocation2 + $0xc] ss:$14 sps:$4 sm:$0x33]   ;;  %v898_v6 = vpack.c.bf16 %v155_v62, %v154_v61 }
  0x55   :  { %853 = vmatpush3.bf16.msra.mxu0 %v852_v30  ;;  %v166_v5 = vld [vmem:[#allocation5 + $0x300] sm:$0xff]  ;;  %v974_v8 = vld [vmem:[#allocation2 + $0x28] ss:$14 sps:$4 sm:$0x33]   ;;  %v167_v9 = vld [vmem:[#allocation5 + $0x308] sm:$0xff]  ;;  %v229_v13 = vrot.slane %v969_v3, %v1155_v21  ;;  %v236_v14 = vrot.slane %v971_v4, %v1155_v21  ;;  %v900_v18 = vpack.c.bf16 %v139_v1, %v138_v0 }
  0x56   :  { %855 = vmatprep.subr.bf16.mxu0 %v854_v36  ;;  %v156_v11 = vld [vmem:[#allocation5 + $0x2b0] sm:$0xff]  ;;  %v157_v12 = vld [vmem:[#allocation5 + $0x2b8] sm:$0xff]  ;;  %v923_v15 = vpack.c.bf16 %v167_v9, %v166_v5  ;;  %v250_v17 = vrot.slane %v974_v8, %v1155_v21  ;;  %v158_v25 = vld [vmem:[#allocation5 + $0x2c0] sm:$0xff] }
  0x57   :  { %885 = vmatpush3.bf16.msra.mxu1 %v884_v35  ;;  %v902_v19 = vpack.c.bf16 %v157_v12, %v156_v11  ;;  %v140_v20 = vld [vmem:[#allocation5 + $0x230] sm:$0xff]  ;;  %v141_v22 = vld [vmem:[#allocation5 + $0x238] sm:$0xff]  ;;  %v252_v23 = vcombine.high %v229_v13, %v243_v16  ;;  %v159_v26 = vld [vmem:[#allocation5 + $0x2c8] sm:$0xff] }
  0x58   :  { %887 = vmatprep.subr.bf16.mxu1 %v886_v40  ;;  %v253_v24 = vcombine.low %v236_v14, %v250_v17  ;;  %v904_v27 = vpack.c.bf16 %v141_v22, %v140_v20  ;;  %v906_v21 = vpack.c.bf16 %v159_v26, %v158_v25  ;;  %v142_v28 = vld [vmem:[#allocation5 + $0x240] sm:$0xff]  ;;  %v143_v29 = vld [vmem:[#allocation5 + $0x248] sm:$0xff]  ;;  %v160_v30 = vld [vmem:[#allocation5 + $0x2d0] sm:$0xff] }
  0x59   :  { %857 = vmatpush3.bf16.msra.mxu0 %v856_v47  ;;  %v161_v31 = vld [vmem:[#allocation5 + $0x2d8] sm:$0xff]  ;;  %v908_v32 = vpack.c.bf16 %v143_v29, %v142_v28  ;;  %v144_v34 = vld [vmem:[#allocation5 + $0x250] sm:$0xff]  ;;  %v162_v36 = vld [vmem:[#allocation5 + $0x2e0] sm:$0xff] }
  0x5a   :  { %891 = vmatprep.subr.bf16.mxu0 %v890_v50  ;;  %v910_v33 = vpack.c.bf16 %v161_v31, %v160_v30  ;;  %v145_v35 = vld [vmem:[#allocation5 + $0x258] sm:$0xff]  ;;  %v163_v37 = vld [vmem:[#allocation5 + $0x2e8] sm:$0xff]  ;;  %v146_v40 = vld [vmem:[#allocation5 + $0x260] sm:$0xff] }
  0x5b   :  { %889 = vmatpush3.bf16.msra.mxu1 %v888_v49  ;;  %v912_v38 = vpack.c.bf16 %v145_v35, %v144_v34  ;;  %v914_v39 = vpack.c.bf16 %v163_v37, %v162_v36  ;;  %v147_v41 = vld [vmem:[#allocation5 + $0x268] sm:$0xff]  ;;  %v164_v42 = vld [vmem:[#allocation5 + $0x2f0] sm:$0xff]  ;;  %v165_v43 = vld [vmem:[#allocation5 + $0x2f8] sm:$0xff]  ;;  %v251_v49 = vcombine.low %v229_v13, %v243_v16 }
  0x5c   :  { %922 = vmatprep.subr.bf16.mxu1 %v1077_v63  ;;  %328 = vmatmul.mubr.f32.vlgmr.msra.gmra.mrb[0].mxu0 %v215_v55  ;;  %v916_v44 = vpack.c.bf16 %v147_v41, %v146_v40  ;;  %v918_v45 = vpack.c.bf16 %v165_v43, %v164_v42  ;;  %v148_v46 = vld [vmem:[#allocation5 + $0x270] sm:$0xff]  ;;  %v149_v47 = vld [vmem:[#allocation5 + $0x278] sm:$0xff]  ;;  %v546_v52 = vld [vmem:[#allocation7 + $0x10] sm:$0xff] }
  0x5d   :  { %893 = vmatpush3.bf16.msra.mxu0 %v892_v56  ;;  %467 = vmatprep.mubr.f32.mxu0 %v252_v23  ;;  %v920_v48 = vpack.c.bf16 %v149_v47, %v148_v46  ;;  %v544_v50 = vld [vmem:[#allocation7] sm:$0xff]  ;;  %v545_v51 = vld [vmem:[#allocation7 + $0x8] sm:$0xff]  ;;  %v547_v54 = vld [vmem:[#allocation7 + $0x18] sm:$0xff] }
  0x5e   :  { %398 = vmatmul.mubr.f32.vlgmr.msra.gmra.mrb[0].mxu1 %v217_v57  ;;  %895 = vmatprep.subr.bf16.mxu0 %v894_v58  ;;  %v926_v53 = vpack.c.bf16 %v545_v51, %v544_v50  ;;  %v929_v55 = vpack.c.bf16 %v547_v54, %v546_v52  ;;  %v548_v56 = vld [vmem:[#allocation7 + $0x20] sm:$0xff]  ;;  %v549_v57 = vld [vmem:[#allocation7 + $0x28] sm:$0xff]  ;;  %v550_v59 = vld [vmem:[#allocation7 + $0x30] sm:$0xff] }
  0x5f   :  { %788 = vmatprep.mubr.msk.f32.mxu1 %vm1078_vm0, %v1079_v10  ;;  %924 = vmatpush3.bf16.msra.mxu1 %v923_v15  ;;  %v932_v58 = vpack.c.bf16 %v549_v57, %v548_v56  ;;  %v551_v60 = vld [vmem:[#allocation7 + $0x38] sm:$0xff]  ;;  %v552_v62 = vld [vmem:[#allocation7 + $0x40] sm:$0xff]  ;;  %v553_v0 = vld [vmem:[#allocation7 + $0x48] sm:$0xff] }
  0x60   :  { %925 = vmatprep.subr.bf16.mxu1 %v1077_v63  ;;  %v935_v61 = vpack.c.bf16 %v551_v60, %v550_v59  ;;  %v938_v1 = vpack.c.bf16 %v553_v0, %v552_v62  ;;  %v555_v3 = vld [vmem:[#allocation7 + $0x58] sm:$0xff]  ;;  %v556_v5 = vld [vmem:[#allocation7 + $0x60] sm:$0xff]  ;;  %v558_v8 = vld [vmem:[#allocation7 + $0x70] sm:$0xff] }
  0x61   :  { %897 = vmatpush3.bf16.msra.mxu0 %v896_v2  ;;  %v554_v2 = vld [vmem:[#allocation7 + $0x50] sm:$0xff]  ;;  %v559_v9 = vld [vmem:[#allocation7 + $0x78] sm:$0xff] }
  0x62   :  { %899 = vmatprep.subr.bf16.mxu0 %v898_v6  ;;  %789 = vmatmul.mubr.msk.f32.vlgmr.msra.gmra.mrb[2].mxu1 %vm260_vm1, %v253_v24  ;;  %v941_v4 = vpack.c.bf16 %v555_v3, %v554_v2  ;;  %v557_v6 = vld [vmem:[#allocation7 + $0x68] sm:$0xff]  ;;  %v656_v12 = vld [vmem:[%s1196_s2] ss:$0 sm:$0xff] }
  0x63   :  { %823 = vmatprep.mubr.msk.f32.mxu1 %vm1078_vm0, %v1079_v10  ;;  %927 = vmatpush3.bf16.msra.mxu1 %v926_v53  ;;  %v944_v7 = vpack.c.bf16 %v557_v6, %v556_v5  ;;  %v947_v10 = vpack.c.bf16 %v559_v9, %v558_v8 }
  0x64   :  { %928 = vmatprep.subr.bf16.mxu1 %v1077_v63 }
  0x65   :  { %901 = vmatpush3.bf16.msra.mxu0 %v900_v18 }
  0x66   :  { %903 = vmatprep.subr.bf16.mxu0 %v902_v19 }
  0x67   :  { %930 = vmatpush3.bf16.msra.mxu1 %v929_v55 }
  0x68   :  { %931 = vmatprep.subr.bf16.mxu1 %v1077_v63 }
  0x69   :  { %905 = vmatpush3.bf16.msra.mxu0 %v904_v27 }
  0x6a   :  { %907 = vmatprep.subr.bf16.mxu0 %v906_v21  ;;  %v658_v21 = vld [vmem:[%s1198_s4] ss:$0 sm:$0xff] }
  0x6b   :  { %933 = vmatpush3.bf16.msra.mxu1 %v932_v58 }
  0x6c   :  { %934 = vmatprep.subr.bf16.mxu1 %v1077_v63 }
  0x6d   :  { %909 = vmatpush3.bf16.msra.mxu0 %v908_v32 }
  0x6e   :  { %911 = vmatprep.subr.bf16.mxu0 %v910_v33 }
  0x6f   :  { %936 = vmatpush3.bf16.msra.mxu1 %v935_v61 }
  0x70   :  { %937 = vmatprep.subr.bf16.mxu1 %v1077_v63 }
  0x71   :  { %913 = vmatpush3.bf16.msra.mxu0 %v912_v38 }
  0x72   :  { %915 = vmatprep.subr.bf16.mxu0 %v914_v39 }
  0x73   :  { %939 = vmatpush3.bf16.msra.mxu1 %v938_v1 }
  0x74   :  { %940 = vmatprep.subr.bf16.mxu1 %v1077_v63 }
  0x75   :  { %917 = vmatpush3.bf16.msra.mxu0 %v916_v44 }
  0x76   :  { %919 = vmatprep.subr.bf16.mxu0 %v918_v45 }
  0x77   :  { %942 = vmatpush3.bf16.msra.mxu1 %v941_v4 }
  0x78   :  { %943 = vmatprep.subr.bf16.mxu1 %v1077_v63 }
  0x79   :  { %921 = vmatpush3.bf16.msra.mxu0 %v920_v48 }
  0x7b   :  { %945 = vmatpush3.bf16.msra.mxu1 %v944_v7 }
  0x7c   :  { %468 = vmatmul.mubr.f32.vlgmr.msra.gmra.mrb[2].mxu0 %v251_v49  ;;  %946 = vmatprep.subr.bf16.mxu1 %v1077_v63 }
  0x7f   :  { %948 = vmatpush3.bf16.msra.mxu1 %v947_v10 }
 0x12f   :  { %v691_v11 = vpop.f32.mrb[0].mxu0 }
 0x130   :  { %v692_v13 = vpop.f32.mrb[1].mxu0 }
 0x131   :  { %v726_v14 = vpop.f32.mrb[0].mxu1  ;;  %v693_v15 = vadd.f32 %v692_v13, %v691_v11 }
 0x132   :  { %v727_v16 = vpop.f32.mrb[1].mxu1 }
 0x133   :  { %v728_v17 = vadd.f32 %v727_v16, %v726_v14  ;;  %v330_v18 = vadd.f32 %v693_v15, %v656_v12 }
 0x135   :  { %v400_v19 = vadd.f32 %v728_v17, %v330_v18  ;;  %v539_v20 = vpop.f32.mrb[2].mxu1 }
 0x136   :  { %v790_v22 = vpop.f32.mrb[3].mxu1 }
 0x14f   :  { %v761_v23 = vpop.f32.mrb[2].mxu0 }
 0x150   :  { %v762_v63 = vpop.f32.mrb[3].mxu0 }
 0x151   :  { %v763_v24 = vadd.f32 %v762_v63, %v761_v23 }
 0x153   :  { %v470_v25 = vadd.f32 %v763_v24, %v400_v19 }
 0x155   :  { %v540_v26 = vadd.f32 %v539_v20, %v470_v25 }
 0x157   :  { %v543_v27 = vmax.f32 %v540_v26, 0.0 }
 0x159   :  { %824 = vmatmul.mubr.f32.vlgmr.msra.gmra.mrb[4].mxu1 %v543_v27 }
 0x22c   :  { %v633_v28 = vpop.f32.mrb[4].mxu1 }
 0x22d   :  { %v634_v29 = vadd.f32 %v658_v21, %v633_v28  ;;  %v825_v30 = vpop.f32.mrb[5].mxu1 }
 0x22f   :  { %637 = vst [vmem:[#allocation8] sm:$0xff] %v634_v29 }
 0x230   :  { %642 = vsyncadd [#allocation4], 96  ;;  %s1080_s2 = smov [#allocation8]  }
 0x231   :  { %s643_s10 = sshll.u32 %s1080_s2, 4  ;;  %s644_s10 = int_to_ptr.vmem [resolvable:$true] %s643_s10 }
 0x232   :  { %s1041_s11 = scalar_lea.vmem %s644_s10, 32  ;;  %s1045_s12 = scalar_lea.vmem %s644_s10, 128 }
 0x233   :  { %p1042_p10 = scmp.ne.s32.totalorder %s644_s10, %s1041_s11  ;;  %p1046_p11 = scmp.lt.s32.totalorder %s644_s10, %s644_s10 }
 0x234   :  { %p1047_p12 = scmp.lt.s32.totalorder %s1045_s12, %s1041_s11 }
 0x236   :  { %p1048_p13 = por %p1047_p12, %p1046_p11 }
 0x238   :  { %p1049_p0 = pnand %p1048_p13, %p1042_p10 }
 0x23a   :  { %1052 = shalt.err (!%p1049_p0)
}
 0x23b   :  { %s1053_s4 = scalar_lea.hbm %s1199_s5, 32 }
 0x23c   :  { %p1054_p1 = scmp.ne.s32.totalorder %s1199_s5, %s1053_s4  ;;  %p1057_p2 = scmp.lt.u32.totalorder %s1053_s4, %s1199_s5 }
 0x23e   :  { %p1059_p3 = pnand %p1057_p2, %p1054_p1 }
 0x240   :  { %1062 = shalt.err (!%p1059_p3)
}
 0x241   :  { %s1081_s18 = smov 32   ;;  %s1082_s19 = smov 2  }
 0x242   :  { %649 = dma.vmem_to_hbm [thread:$0]  %s644_s10, 32, %s1199_s5, [#allocation4], %s1081_s18, %s1081_s18, %s1082_s19  }
 0x243   :  { %1067 = dma.done.wait [#allocation4], 128  }
 0x244   :  { %1068 = vsyncadd [#allocation4], 4294967168 }
 0x245   :  { %653 = vsyncpa [#allocation3], 1 }
 0x246   :  { %654 = vsyncpa [#allocation6], 1 }
 0x247   :  { %655 = vsyncpa [#allocation4], 1 }

</bundles_post_ra>
